<compile_context>
chip_gen: v6e
topology: v6e:2x2x1
jax: 0.10.0
libtpu: 0.0.40
codegen_flags: <defaults>
</compile_context>

<pallas_src>
import functools

import jax
import jax.numpy as jnp
from jax import lax
from jax.experimental import pallas as pl
from jax.experimental.pallas import tpu as pltpu

LANE = 128  # lane width (last dim)


def _tpu_generation():
    """Best-effort TPU generation detection (5 / 6 / 7); default 6."""
    try:
        kind = jax.devices()[0].device_kind.lower()
    except Exception:
        return 6
    for g in (7, 6, 5, 4):
        if str(g) in kind:
            return g
    return 6


def _ring_loss_kernel(x_ref, y_ref, o_ref, *, block_r, sub, total_rows,
                      needs_mask):
    """x_ref / y_ref: (block_r, 128) VMEM tiles; o_ref: (sub, 128) f32 partial
    sums, resident across the (arbitrary) step axis (one block per split)."""
    split = pl.program_id(0)
    step = pl.program_id(1)
    steps = pl.num_programs(1)

    @pl.when(step == 0)
    def _():
        o_ref[...] = jnp.zeros_like(o_ref)

    n_chunks = block_r // sub
    unroll = min(n_chunks, 8)

    def chunk_val(k):
        r0 = pl.multiple_of(k * sub, sub)
        x = x_ref[pl.ds(r0, sub), :].astype(jnp.float32)
        y = y_ref[pl.ds(r0, sub), :].astype(jnp.float32)
        return jnp.abs(x * x + y * y - 1.0)

    def run_full():
        def body(k, acc):
            return acc + chunk_val(k)
        return lax.fori_loop(0, n_chunks, body,
                             jnp.zeros((sub, LANE), jnp.float32),
                             unroll=unroll)

    if not needs_mask:
        o_ref[...] += run_full()
    else:
        block_idx = split * steps + step
        rem = total_rows - block_idx * block_r  # valid rows here (may be <= 0)

        @pl.when(rem >= block_r)           # fast path: full block, no masking
        def _():
            o_ref[...] += run_full()

        @pl.when(rem < block_r)            # partial or phantom last block
        def _():
            row_ids = lax.broadcasted_iota(jnp.int32, (sub, LANE), 0)

            def body(k, acc):
                r0 = pl.multiple_of(k * sub, sub)
                x = x_ref[pl.ds(r0, sub), :].astype(jnp.float32)
                y = y_ref[pl.ds(r0, sub), :].astype(jnp.float32)
                v = jnp.abs(x * x + y * y - 1.0)
                valid = row_ids < (rem - k * sub)
                return acc + jnp.where(valid, v, 0.0)

            o_ref[...] += lax.fori_loop(
                0, n_chunks, body, jnp.zeros((sub, LANE), jnp.float32),
                unroll=unroll)


def ring_loss(x, y, weight, *, block_rows=None):
    """Equivalent of RingLoss(weight).forward(x, y). `weight` is a scalar.

    block_rows optionally overrides the per-generation block size (testing)."""
    assert x.shape == y.shape and x.dtype == y.dtype
    n = int(x.size)
    assert n > 0

    itemsize = jnp.dtype(x.dtype).itemsize
    sub = 8 * max(1, 4 // itemsize)        # full-vreg chunk: 8/16/32 sublanes

    xf = x.reshape(-1)
    yf = y.reshape(-1)
    # Pad the flat tail to a multiple of sub*LANE with (x=1, y=0): each padded
    # element contributes |1 + 0 - 1| = 0 to the sum (zero-padding would be
    # wrong: it would add 1 per element).
    pad = (-n) % (sub * LANE)
    if pad:
        xf = jnp.concatenate([xf, jnp.ones((pad,), xf.dtype)])
        yf = jnp.concatenate([yf, jnp.zeros((pad,), yf.dtype)])
    rows = (n + pad) // LANE               # multiple of `sub`
    x2 = xf.reshape(rows, LANE)
    y2 = yf.reshape(rows, LANE)

    # Generation-dependent block size (rows), scaled so the byte footprint is
    # constant across dtypes: 2 inputs x 2 buffers x block_r x 512 B-of-f32-eq.
    if block_rows is None:
        base = {5: 4096, 6: 8192, 7: 16384}.get(_tpu_generation(), 8192)
        cap = base * max(1, 4 // itemsize)
    else:
        cap = int(block_rows)
    cap = max(sub, (cap // sub) * sub)
    block_r = min(cap, rows)

    num_blocks = -(-rows // block_r)
    num_splits = 2 if num_blocks >= 2 else 1     # megacore split (v7x: 2 TCs)
    steps = -(-num_blocks // num_splits)
    # Masking is needed when the grid covers more rows than exist (partial
    # last block and/or phantom block when num_blocks is odd).
    needs_mask = (num_splits * steps * block_r) != rows

    last_block = num_blocks - 1
    # Clamp phantom block indices to a valid block; its contribution is fully
    # masked to zero inside the kernel.
    in_map = lambda s, i: (jnp.minimum(s * steps + i, last_block), 0)

    # Explicit scoped-VMEM limit: footprint of double-buffered inputs + margin,
    # kept well under v7x's 64 MiB physical VMEM.
    inbuf_bytes = 2 * 2 * block_r * LANE * itemsize
    vmem_limit = int(min(max(inbuf_bytes + (8 << 20), 32 << 20), 48 << 20))

    partials = pl.pallas_call(
        functools.partial(_ring_loss_kernel, block_r=block_r, sub=sub,
                          total_rows=rows, needs_mask=needs_mask),
        out_shape=jax.ShapeDtypeStruct((num_splits * sub, LANE), jnp.float32),
        grid_spec=pltpu.PrefetchScalarGridSpec(
            num_scalar_prefetch=0,
            grid=(num_splits, steps),
            in_specs=[
                pl.BlockSpec((block_r, LANE), in_map),
                pl.BlockSpec((block_r, LANE), in_map),
            ],
            out_specs=pl.BlockSpec((sub, LANE), lambda s, i: (s, 0)),
        ),
        compiler_params=pltpu.CompilerParams(
            dimension_semantics=("parallel", "arbitrary"),
            vmem_limit_bytes=vmem_limit),
    )(x2, y2)

    # torch.abs(weight) happens in __init__; mean = sum / n (original n, the
    # padded elements contribute exactly 0). Applied once on the tiny output.
    # TODO(synk): optionally fold this final reduce into the kernel's last
    # step to shave a few us of dispatch for tiny inputs.
    w = jnp.abs(jnp.asarray(weight, jnp.float32))
    return jnp.sum(partials) * (w / jnp.float32(n))


def _reference(x, y, weight):
    x = x.astype(jnp.float32)
    y = y.astype(jnp.float32)
    return jnp.mean(jnp.abs(weight) * jnp.abs(x * x + y * y - 1.0))


if __name__ == "__main__":
    key = jax.random.PRNGKey(0)
    ks = jax.random.split(key, 8)
    weight = jnp.float32(0.5)  # deterministic "parameter" from __init__

    # 1) Shipped problem size: NCHW (2, 4, 16, 16) -> single block.
    shape = (2, 4, 16, 16)
    x = jax.random.normal(ks[0], shape, dtype=jnp.float32)
    y = jax.random.normal(ks[1], shape, dtype=jnp.float32)
    out = ring_loss(x, y, weight)
    jax.block_until_ready(out)
    ref = _reference(x, y, weight)
    assert jnp.allclose(out, ref, rtol=1e-5, atol=1e-6), (out, ref)

    # 2) Awkward element count -> wrapper-side (x=1, y=0) tail padding.
    xo = jax.random.normal(ks[2], (3, 5, 17, 19), dtype=jnp.float32)
    yo = jax.random.normal(ks[3], (3, 5, 17, 19), dtype=jnp.float32)
    out_o = ring_loss(xo, yo, weight)
    jax.block_until_ready(out_o)
    ref_o = _reference(xo, yo, weight)
    assert jnp.allclose(out_o, ref_o, rtol=1e-5, atol=1e-6), (out_o, ref_o)

    # 3) Multi-block + dual accumulators + masked partial last block.
    xb = jax.random.normal(ks[4], (2, 100, 128), dtype=jnp.float32)
    yb = jax.random.normal(ks[5], (2, 100, 128), dtype=jnp.float32)
    out_b = ring_loss(xb, yb, weight, block_rows=64)
    jax.block_until_ready(out_b)
    ref_b = _reference(xb, yb, weight)
    assert jnp.allclose(out_b, ref_b, rtol=1e-4, atol=1e-5), (out_b, ref_b)

    # 4) Odd block count -> clamped + fully-masked phantom block on split 1.
    out_c = ring_loss(xb, yb, weight, block_rows=72)
    jax.block_until_ready(out_c)
    assert jnp.allclose(out_c, ref_b, rtol=1e-4, atol=1e-5), (out_c, ref_b)

    # 5) bf16 inputs -> full packed-vreg (16, 128) chunks, f32 accumulation.
    xh = jax.random.normal(ks[6], (4, 8, 16, 16), jnp.float32).astype(jnp.bfloat16)
    yh = jax.random.normal(ks[7], (4, 8, 16, 16), jnp.float32).astype(jnp.bfloat16)
    out_h = ring_loss(xh, yh, weight)
    jax.block_until_ready(out_h)
    ref_h = _reference(xh, yh, weight)
    assert jnp.allclose(out_h, ref_h, rtol=1e-4, atol=1e-5), (out_h, ref_h)

    print("KERNEL_OK")
</pallas_src>

<mosaic_0001>
module attributes {stable_mosaic.version = 11 : i64} {
  func.func @_ring_loss_kernel(%arg0: i32, %arg1: i32, %arg2: memref<16x128xf32, #tpu.memory_space<vmem>>, %arg3: memref<16x128xf32, #tpu.memory_space<vmem>>, %arg4: memref<8x128xf32, #tpu.memory_space<vmem>>) attributes {dimension_semantics = [#tpu.dimension_semantics<parallel>, #tpu.dimension_semantics<arbitrary>], iteration_bounds = array<i64: 1, 1>, scalar_prefetch = 0 : i64, scratch_operands = 0 : i64, tpu.core_type = #tpu.core_type<tc>, window_params = [{transform_indices = @transform_0, window_bounds = array<i64: 16, 128>}, {transform_indices = @transform_1, window_bounds = array<i64: 16, 128>}, {transform_indices = @transform_2, window_bounds = array<i64: 8, 128>}]} {
    %c0_i32 = arith.constant 0 : i32
    %0 = arith.cmpi eq, %arg1, %c0_i32 : i32
    %1 = arith.extui %0 : i1 to i32
    %c0_i32_0 = arith.constant 0 : i32
    %2 = arith.cmpi ne, %1, %c0_i32_0 : i32
    scf.if %2 {
      %cst_12 = arith.constant 0.000000e+00 : f32
      %33 = vector.broadcast %cst_12 : f32 to vector<8x128xf32>
      %c0_13 = arith.constant 0 : index
      %c0_14 = arith.constant 0 : index
      %34 = vector.load %arg4[%c0_13, %c0_14] : memref<8x128xf32, #tpu.memory_space<vmem>>, vector<8x128xf32>
      tpu.vector_store %arg4[%c0_13, %c0_14], %33 {strides = array<i32>} : memref<8x128xf32, #tpu.memory_space<vmem>>, vector<8x128xf32>,
    } else {
    }
    %c0 = arith.constant 0 : index
    %c0_1 = arith.constant 0 : index
    %3 = vector.load %arg4[%c0, %c0_1] : memref<8x128xf32, #tpu.memory_space<vmem>>, vector<8x128xf32>
    %cst = arith.constant 0.000000e+00 : f32
    %4 = vector.broadcast %cst : f32 to vector<8x128xf32>
    %c0_i32_2 = arith.constant 0 : i32
    %c8_i32 = arith.constant 8 : i32
    %5 = arith.muli %c0_i32_2, %c8_i32 : i32
    %6 = tpu.assume_multiple %5, 8 : i32
    %7 = arith.index_cast %6 : i32 to index
    %c0_3 = arith.constant 0 : index
    %8 = vector.load %arg2[%7, %c0_3] : memref<16x128xf32, #tpu.memory_space<vmem>>, vector<8x128xf32>
    %9 = arith.index_cast %6 : i32 to index
    %c0_4 = arith.constant 0 : index
    %10 = vector.load %arg3[%9, %c0_4] : memref<16x128xf32, #tpu.memory_space<vmem>>, vector<8x128xf32>
    %11 = arith.mulf %8, %8 : vector<8x128xf32>
    %12 = arith.mulf %10, %10 : vector<8x128xf32>
    %13 = arith.addf %11, %12 : vector<8x128xf32>
    %cst_5 = arith.constant 1.000000e+00 : f32
    %14 = vector.broadcast %cst_5 : f32 to vector<8x128xf32>
    %15 = arith.subf %13, %14 : vector<8x128xf32>
    %16 = math.absf %15 : vector<8x128xf32>
    %17 = arith.addf %4, %16 : vector<8x128xf32>
    %c1_i32 = arith.constant 1 : i32
    %c8_i32_6 = arith.constant 8 : i32
    %18 = arith.muli %c1_i32, %c8_i32_6 : i32
    %19 = tpu.assume_multiple %18, 8 : i32
    %20 = arith.index_cast %19 : i32 to index
    %c0_7 = arith.constant 0 : index
    %21 = vector.load %arg2[%20, %c0_7] : memref<16x128xf32, #tpu.memory_space<vmem>>, vector<8x128xf32>
    %22 = arith.index_cast %19 : i32 to index
    %c0_8 = arith.constant 0 : index
    %23 = vector.load %arg3[%22, %c0_8] : memref<16x128xf32, #tpu.memory_space<vmem>>, vector<8x128xf32>
    %24 = arith.mulf %21, %21 : vector<8x128xf32>
    %25 = arith.mulf %23, %23 : vector<8x128xf32>
    %26 = arith.addf %24, %25 : vector<8x128xf32>
    %cst_9 = arith.constant 1.000000e+00 : f32
    %27 = vector.broadcast %cst_9 : f32 to vector<8x128xf32>
    %28 = arith.subf %26, %27 : vector<8x128xf32>
    %29 = math.absf %28 : vector<8x128xf32>
    %30 = arith.addf %17, %29 : vector<8x128xf32>
    %c2_i32 = arith.constant 2 : i32
    %31 = arith.addf %3, %30 : vector<8x128xf32>
    %c0_10 = arith.constant 0 : index
    %c0_11 = arith.constant 0 : index
    %32 = vector.load %arg4[%c0_10, %c0_11] : memref<8x128xf32, #tpu.memory_space<vmem>>, vector<8x128xf32>
    tpu.vector_store %arg4[%c0_10, %c0_11], %31 {strides = array<i32>} : memref<8x128xf32, #tpu.memory_space<vmem>>, vector<8x128xf32>,
    return
  }
  func.func @transform_0(%arg0: i32, %arg1: i32) -> (i32, i32) {
    %c1_i32 = arith.constant 1 : i32
    %0 = arith.muli %arg0, %c1_i32 : i32
    %1 = arith.addi %0, %arg1 : i32
    %c0_i32 = arith.constant 0 : i32
    %2 = arith.minsi %1, %c0_i32 : i32
    %c0_i32_0 = arith.constant 0 : i32
    %c0_i32_1 = arith.constant 0 : i32
    return %2, %c0_i32_0 : i32, i32
  }
  func.func @transform_1(%arg0: i32, %arg1: i32) -> (i32, i32) {
    %c1_i32 = arith.constant 1 : i32
    %0 = arith.muli %arg0, %c1_i32 : i32
    %1 = arith.addi %0, %arg1 : i32
    %c0_i32 = arith.constant 0 : i32
    %2 = arith.minsi %1, %c0_i32 : i32
    %c0_i32_0 = arith.constant 0 : i32
    %c0_i32_1 = arith.constant 0 : i32
    return %2, %c0_i32_0 : i32, i32
  }
  func.func @transform_2(%arg0: i32, %arg1: i32) -> (i32, i32) {
    %c0_i32 = arith.constant 0 : i32
    %c0_i32_0 = arith.constant 0 : i32
    return %arg0, %c0_i32 : i32, i32
  }
}

</mosaic_0001>

<bundles_post_ra>
// kernel: tpu_custom_call.1
= control target key start
LH: loop header
LB: loop body
LE: loop exit
PB: predicated region body
PF: predicated region fallthrough
CT: control target
= control target key end

     0   :  { %7 = vsyncpa [#allocation3], 0  ;;  %s209_s0 = inlined_call_operand.hbm [shape: f32[16,128], index: 0, kind: input, shape index: {}]   ;;  %s210_s1 = inlined_call_operand.hbm [shape: f32[16,128], index: 1, kind: input, shape index: {}]   ;;  %s211_s2 = inlined_call_operand.hbm [shape: f32[8,128], index: 2, kind: output, shape index: {}]  }
   0x1   :  { %8 = vsyncpa [#allocation6], 0 }
   0x2   :  { %9 = vsyncpa [#allocation4], 0  ;;  %s180_s9 = smov [#allocation2]  }
   0x3   :  { %s21_s10 = sshll.u32 %s180_s9, 4  ;;  %s22_s10 = int_to_ptr.vmem [resolvable:$true] %s21_s10 }
   0x4   :  { %s122_s11 = scalar_lea.vmem %s22_s10, 256  ;;  %p127_p1 = scmp.lt.s32.totalorder %s22_s10, %s22_s10 }
   0x5   :  { %p123_p0 = scmp.ne.s32.totalorder %s22_s10, %s122_s11  ;;  %p128_p2 = scmp.lt.s32.totalorder %s122_s11, %s122_s11 }
   0x7   :  { %p129_p3 = por %p128_p2, %p127_p1 }
   0x9   :  { %p130_p4 = pnand %p129_p3, %p123_p0 }
   0xb   :  { %133 = shalt.err (!%p130_p4)
}
   0xc   :  { %s181_s12 = smov 128   ;;  %s182_s13 = smov 8  }
   0xd   :  { %27 = dma.hbm_to_vmem [thread:$0]  %s209_s0, 256, %s22_s10, [#allocation3], %s181_s12, %s181_s12, %s182_s13  }
   0xe   :  { %s183_s16 = smov [#allocation5]  }
   0xf   :  { %s39_s17 = sshll.u32 %s183_s16, 4  ;;  %s40_s17 = int_to_ptr.vmem [resolvable:$true] %s39_s17 }
  0x10   :  { %s142_s18 = scalar_lea.vmem %s40_s17, 256  ;;  %p147_p6 = scmp.lt.s32.totalorder %s40_s17, %s40_s17 }
  0x11   :  { %p143_p5 = scmp.ne.s32.totalorder %s40_s17, %s142_s18  ;;  %p148_p7 = scmp.lt.s32.totalorder %s142_s18, %s142_s18 }
  0x13   :  { %p149_p8 = por %p148_p7, %p147_p6 }
  0x15   :  { %p150_p9 = pnand %p149_p8, %p143_p5 }
  0x17   :  { %153 = shalt.err (!%p150_p9)
}
  0x18   :  { %45 = dma.hbm_to_vmem [thread:$0]  %s210_s1, 256, %s40_s17, [#allocation6], %s181_s12, %s181_s12, %s182_s13  }
  0x19   :  { %174 = dma.done.wait [#allocation3], 256  }
  0x1a   :  { %175 = vsyncadd [#allocation3], 4294967040 }
  0x1b   :  { %176 = dma.done.wait [#allocation6], 256  }
  0x1c   :  { %177 = vsyncadd [#allocation6], 4294967040  ;;  %v66_v0 = vld [vmem:[#allocation2] sm:$0xff]  ;;  %v67_v1 = vld [vmem:[#allocation5] sm:$0xff]  ;;  %s184_s0 = smov [#allocation7]  }
  0x1d   :  { %v75_v2 = vld [vmem:[#allocation2 + $0x8] sm:$0xff]  ;;  %v68_v3 = vmul.f32 %v66_v0, %v66_v0  ;;  %v69_v4 = vmul.f32 %v67_v1, %v67_v1  ;;  %v77_v5 = vld [vmem:[#allocation5 + $0x8] sm:$0xff]  ;;  %s92_s1 = sshll.u32 %s184_s0, 4  ;;  %s93_s1 = int_to_ptr.vmem [resolvable:$true] %s92_s1 }
  0x1e   :  { %v78_v6 = vmul.f32 %v75_v2, %v75_v2  ;;  %v79_v7 = vmul.f32 %v77_v5, %v77_v5  ;;  %s154_s21 = scalar_lea.vmem %s93_s1, 128  ;;  %p159_p11 = scmp.lt.s32.totalorder %s93_s1, %s93_s1 }
  0x1f   :  { %v70_v8 = vadd.f32 %v69_v4, %v68_v3  ;;  %p155_p10 = scmp.ne.s32.totalorder %s93_s1, %s154_s21  ;;  %p160_p12 = scmp.lt.s32.totalorder %s154_s21, %s154_s21 }
  0x20   :  { %v80_v9 = vadd.f32 %v79_v7, %v78_v6 }
  0x21   :  { %v106_v10 = vadd.f32 -1.0, %v70_v8  ;;  %p161_p13 = por %p160_p12, %p159_p11 }
  0x22   :  { %v107_v11 = vadd.f32 -1.0, %v80_v9 }
  0x23   :  { %v72_v12 = vand.u32 2147483647, %v106_v10  ;;  %p162_p0 = pnand %p161_p13, %p155_p10 }
  0x24   :  { %v82_v13 = vand.u32 2147483647, %v107_v11 }
  0x26   :  { %v83_v14 = vadd.f32 %v82_v13, %v72_v12 }
  0x28   :  { %85 = vst [vmem:[#allocation7] sm:$0xff] %v83_v14 }
  0x29   :  { %165 = shalt.err (!%p162_p0)
}
  0x2a   :  { %95 = dma.vmem_to_hbm [thread:$0]  %s93_s1, 128, %s211_s2, [#allocation4]  }
  0x2b   :  { %178 = dma.done.wait [#allocation4], 128  }
  0x2c   :  { %179 = vsyncadd [#allocation4], 4294967168 }
  0x2d   :  { %99 = vsyncpa [#allocation3], 1 }
  0x2e   :  { %100 = vsyncpa [#allocation6], 1 }
  0x2f   :  { %101 = vsyncpa [#allocation4], 1 }

</bundles_post_ra>
